<compile_context>
chip_gen: v7x
topology: tpu7x:2x2x1
jax: 0.10.0
libtpu: 0.0.40
codegen_flags: <defaults>
</compile_context>

<pallas_src>
import functools

import jax
import jax.numpy as jnp
from jax import lax
from jax.experimental import pallas as pl
from jax.experimental.pallas import tpu as pltpu

_LANES = 128
_SUBLANES = 8


def _round_up(x, m):
    return ((x + m - 1) // m) * m


def _vmem_capacity_bytes():
    """Physical VMEM of the current chip; conservative fallback (v7x per-TC)."""
    try:
        info = pltpu.get_tpu_info()
        cap = getattr(info, "vmem_capacity_bytes", None)
        if cap:
            return int(cap)
    except Exception:
        pass
    return 64 * 1024 * 1024


def _focal_loss_kernel(logits_ref, labels_ref, partial_ref, *, batch, alpha, gamma):
    """One batch tile: per-sample focal loss summed into a per-tile partial."""
    logits = logits_ref[...]                              # (tb, C), input dtype
    labels = labels_ref[...]                              # (tb, 1) int32
    tb, c = logits.shape

    # Row-validity mask for the batch tail: OOB rows of the last block hold
    # garbage logits/labels and must contribute exactly 0.
    row_ids = lax.broadcasted_iota(jnp.int32, (tb, 1), 0) + pl.program_id(0) * tb
    row_valid = row_ids < batch                            # (tb, 1) bool

    # Numerically stable log-softmax.  max / subtract / select stay in the input
    # dtype (bf16-native VPU on v6e/v7x); accumulation is f32.
    m = jnp.max(logits, axis=-1, keepdims=True)            # (tb, 1)
    shifted = logits - m                                    # (tb, C)

    class_ids = lax.broadcasted_iota(jnp.int32, (tb, c), 1)
    true_shifted = jnp.sum(
        jnp.where(class_ids == labels, shifted, jnp.zeros_like(shifted)),
        axis=-1, keepdims=True).astype(jnp.float32)         # (tb, 1) f32

    sum_exp = jnp.sum(jnp.exp(shifted.astype(jnp.float32)),
                      axis=-1, keepdims=True)                # (tb, 1) f32

    ce = jnp.log(sum_exp) - true_shifted                    # == lse - logit[label]
    p = jnp.exp(-ce)
    one_minus_p = 1.0 - p
    if gamma == 2.0:
        weight = one_minus_p * one_minus_p                   # single VPU square
    elif gamma == 1.0:
        weight = one_minus_p
    elif gamma == 0.0:
        weight = jnp.ones_like(one_minus_p)
    else:
        weight = jnp.power(one_minus_p, gamma)
    focal = alpha * weight * ce                              # (tb, 1) f32

    tile_sum = jnp.sum(jnp.where(row_valid, focal, 0.0))

    # Lane-dense (1, 8, 128) partial block; wrapper reads lane [0, 0] per tile.
    partial_ref[...] = jnp.full(partial_ref.shape, tile_sum, dtype=jnp.float32)


def _choose_tile_batch(B, C, itemsize):
    """Pick a batch-tile size against a generation-aware VMEM live budget."""
    vmem_cap = _vmem_capacity_bytes()
    # ~21 MiB live on v7x (64 MiB physical), ~42 MiB on v5e/v6e (128 MiB).
    live_budget = min(vmem_cap // 3, 42 * 1024 * 1024)
    cp = _round_up(C, _LANES)   # VMEM lane layout rounds the minor dim anyway
    # ~2 double-buffered input copies + ~5 concurrent f32 temps per row.
    bytes_per_row = cp * (2 * itemsize + 5 * 4)
    tb = live_budget // max(bytes_per_row, 1)
    tb = max(_SUBLANES, min(8192, (tb // _SUBLANES) * _SUBLANES))
    return tb


def focal_loss(logits, labels, *, alpha=0.25, gamma=2.0, tile_batch=None,
               vmem_limit_bytes=None):
    """Mean focal loss. logits: (B, C) float32/bfloat16, labels: (B,) int.

    Matches the PyTorch FocalLoss forward (CrossEntropyLoss(reduction='none')
    -> p = exp(-ce) -> alpha * (1-p)**gamma * ce -> mean).
    """
    B, C = logits.shape
    itemsize = jnp.dtype(logits.dtype).itemsize

    if tile_batch is None:
        tb = _choose_tile_batch(B, C, itemsize)
    else:
        tb = _round_up(int(tile_batch), _SUBLANES)
    tb = min(tb, _round_up(B, _SUBLANES))
    # Keep >= 2 grid tiles when the batch allows it so the "parallel" axis can
    # shard across both v7x TensorCores (harmless on v5e/v6e).
    if B > 2 * _SUBLANES:
        tb = min(tb, _round_up((B + 1) // 2, _SUBLANES))
    tb = max(tb, _SUBLANES)

    n_tiles = pl.cdiv(B, tb)

    if vmem_limit_bytes is None:
        vmem_limit_bytes = min(3 * _vmem_capacity_bytes() // 4, 96 * 1024 * 1024)

    labels2d = labels.astype(jnp.int32).reshape(B, 1)

    kernel = functools.partial(
        _focal_loss_kernel, batch=B, alpha=float(alpha), gamma=float(gamma))

    cost = pl.CostEstimate(
        flops=8 * B * C + 8 * B,
        transcendentals=B * C + 2 * B,
        bytes_accessed=B * C * itemsize + B * 4 + n_tiles * _SUBLANES * _LANES * 4,
    )

    # TODO(synk): for very large num_classes (tile > VMEM budget even at tb=8),
    # add a second ("arbitrary", last) grid axis over C with an online running
    # max / running sum-exp / running true-logit.
    partials = pl.pallas_call(
        kernel,
        out_shape=jax.ShapeDtypeStruct((n_tiles, _SUBLANES, _LANES), jnp.float32),
        grid=(n_tiles,),
        in_specs=[
            # Last dim == C (full array dim) -> no class padding needed.
            pl.BlockSpec((tb, C), lambda i: (i, 0)),
            pl.BlockSpec((tb, 1), lambda i: (i, 0)),
        ],
        out_specs=pl.BlockSpec((1, _SUBLANES, _LANES), lambda i: (i, 0, 0)),
        compiler_params=pltpu.CompilerParams(
            dimension_semantics=("parallel",),
            vmem_limit_bytes=int(vmem_limit_bytes),
        ),
        cost_estimate=cost,
    )(logits, labels2d)

    # Every element of a tile's (8, 128) block holds the same partial sum.
    return jnp.sum(partials[:, 0, 0]) / jnp.float32(B)


def focal_loss_ref(logits, labels, alpha=0.25, gamma=2.0):
    """Pure-JAX reference for sanity checking."""
    logits = logits.astype(jnp.float32)
    lse = jax.nn.logsumexp(logits, axis=-1)
    true_logit = jnp.take_along_axis(logits, labels[:, None], axis=-1)[:, 0]
    ce = lse - true_logit
    p = jnp.exp(-ce)
    return jnp.mean(alpha * (1.0 - p) ** gamma * ce)


if __name__ == "__main__":
    key = jax.random.PRNGKey(0)
    k1, k2, k3, k4 = jax.random.split(key, 4)

    # Primary small test (matches the module's (batch, num_classes) contract).
    B, C = 8, 32
    logits = jax.random.normal(k1, (B, C), dtype=jnp.float32)
    labels = jax.random.randint(k2, (B,), 0, C, dtype=jnp.int32)
    out = focal_loss(logits, labels)
    jax.block_until_ready(out)
    ref = focal_loss_ref(logits, labels)
    assert jnp.allclose(out, ref, atol=1e-5, rtol=1e-5), (out, ref)

    # Multi-tile grid with non-128-aligned class count and a batch tail:
    # exercises the full-dim class BlockSpec and the in-kernel row mask.
    B2, C2 = 37, 50
    logits2 = jax.random.normal(k3, (B2, C2), dtype=jnp.float32)
    labels2 = jax.random.randint(k4, (B2,), 0, C2, dtype=jnp.int32)
    out2 = focal_loss(logits2, labels2, tile_batch=16)   # -> 3 grid tiles
    jax.block_until_ready(out2)
    ref2 = focal_loss_ref(logits2, labels2)
    assert jnp.allclose(out2, ref2, atol=1e-5, rtol=1e-5), (out2, ref2)

    print("KERNEL_OK")
</pallas_src>

<mosaic_0001>
module attributes {stable_mosaic.version = 11 : i64} {
  func.func @_focal_loss_kernel(%arg0: i32, %arg1: memref<8x32xf32, #tpu.memory_space<vmem>>, %arg2: memref<8x1xi32, #tpu.memory_space<vmem>>, %arg3: memref<1x8x128xf32, #tpu.memory_space<vmem>>) attributes {dimension_semantics = [#tpu.dimension_semantics<parallel>], iteration_bounds = array<i64: 1>, scalar_prefetch = 0 : i64, scratch_operands = 0 : i64, tpu.core_type = #tpu.core_type<tc>, window_params = [{transform_indices = @transform_0, window_bounds = array<i64: 8, 32>}, {transform_indices = @transform_1, window_bounds = array<i64: 8, 1>}, {transform_indices = @transform_2, window_bounds = array<i64: 1, 8, 128>}]} {
    %c0 = arith.constant 0 : index
    %c0_0 = arith.constant 0 : index
    %0 = vector.load %arg1[%c0, %c0_0] : memref<8x32xf32, #tpu.memory_space<vmem>>, vector<8x32xf32>
    %c0_1 = arith.constant 0 : index
    %c0_2 = arith.constant 0 : index
    %1 = vector.load %arg2[%c0_1, %c0_2] : memref<8x1xi32, #tpu.memory_space<vmem>>, vector<8x1xi32>
    %2 = tpu.iota {dimensions = array<i32: 0>} : vector<8x1xi32>
    %c8_i32 = arith.constant 8 : i32
    %3 = arith.muli %arg0, %c8_i32 : i32
    %4 = vector.broadcast %3 : i32 to vector<8x1xi32>
    %5 = arith.addi %2, %4 : vector<8x1xi32>
    %c8_i32_3 = arith.constant 8 : i32
    %6 = vector.broadcast %c8_i32_3 : i32 to vector<8x1xi32>
    %7 = arith.cmpi slt, %5, %6 : vector<8x1xi32>
    %cst = arith.constant dense<0xFF800000> : vector<8xf32>
    %8 = vector.multi_reduction <maximumf>, %0, %cst [1] : vector<8x32xf32> to vector<8xf32>
    %9 = vector.shape_cast %8 : vector<8xf32> to vector<8x1xf32>
    %10 = vector.broadcast %9 : vector<8x1xf32> to vector<8x32xf32>
    %11 = arith.subf %0, %10 : vector<8x32xf32>
    %12 = tpu.iota {dimensions = array<i32: 1>} : vector<8x32xi32>
    %13 = vector.broadcast %1 : vector<8x1xi32> to vector<8x32xi32>
    %14 = arith.cmpi eq, %12, %13 : vector<8x32xi32>
    %cst_4 = arith.constant 0.000000e+00 : f32
    %15 = vector.broadcast %cst_4 : f32 to vector<8x32xf32>
    %16 = arith.select %14, %11, %15 : vector<8x32xi1>, vector<8x32xf32>
    %cst_5 = arith.constant dense<0.000000e+00> : vector<8xf32>
    %17 = vector.multi_reduction <add>, %16, %cst_5 [1] : vector<8x32xf32> to vector<8xf32>
    %18 = vector.shape_cast %17 : vector<8xf32> to vector<8x1xf32>
    %19 = math.exp %11 : vector<8x32xf32>
    %cst_6 = arith.constant dense<0.000000e+00> : vector<8xf32>
    %20 = vector.multi_reduction <add>, %19, %cst_6 [1] : vector<8x32xf32> to vector<8xf32>
    %21 = vector.shape_cast %20 : vector<8xf32> to vector<8x1xf32>
    %22 = math.log %21 : vector<8x1xf32>
    %23 = arith.subf %22, %18 : vector<8x1xf32>
    %cst_7 = arith.constant 0.000000e+00 : f32
    %24 = vector.broadcast %cst_7 : f32 to vector<8x1xf32>
    %25 = arith.subf %24, %23 : vector<8x1xf32>
    %26 = math.exp %25 : vector<8x1xf32>
    %cst_8 = arith.constant 1.000000e+00 : f32
    %27 = vector.broadcast %cst_8 : f32 to vector<8x1xf32>
    %28 = arith.subf %27, %26 : vector<8x1xf32>
    %29 = arith.mulf %28, %28 : vector<8x1xf32>
    %cst_9 = arith.constant 2.500000e-01 : f32
    %30 = vector.broadcast %cst_9 : f32 to vector<8x1xf32>
    %31 = arith.mulf %30, %29 : vector<8x1xf32>
    %32 = arith.mulf %31, %23 : vector<8x1xf32>
    %cst_10 = arith.constant 0.000000e+00 : f32
    %33 = vector.broadcast %cst_10 : f32 to vector<8x1xf32>
    %34 = arith.select %7, %32, %33 : vector<8x1xi1>, vector<8x1xf32>
    %35 = vector.shape_cast %34 : vector<8x1xf32> to vector<1x8x1xf32>
    %cst_11 = arith.constant dense<0.000000e+00> : vector<1xf32>
    %36 = vector.multi_reduction <add>, %35, %cst_11 [1, 2] : vector<1x8x1xf32> to vector<1xf32>
    %37 = vector.shape_cast %36 : vector<1xf32> to vector<1x1x1xf32>
    %38 = vector.extract %37[0, 0, 0] : f32 from vector<1x1x1xf32>
    %39 = vector.broadcast %38 : f32 to vector<1x8x128xf32>
    %c0_12 = arith.constant 0 : index
    %c0_13 = arith.constant 0 : index
    %c0_14 = arith.constant 0 : index
    %40 = vector.load %arg3[%c0_12, %c0_13, %c0_14] : memref<1x8x128xf32, #tpu.memory_space<vmem>>, vector<1x8x128xf32>
    tpu.vector_store %arg3[%c0_12, %c0_13, %c0_14], %39 {strides = array<i32>} : memref<1x8x128xf32, #tpu.memory_space<vmem>>, vector<1x8x128xf32>,
    return
  }
  func.func @transform_0(%arg0: i32) -> (i32, i32) {
    %c0_i32 = arith.constant 0 : i32
    %c0_i32_0 = arith.constant 0 : i32
    return %arg0, %c0_i32 : i32, i32
  }
  func.func @transform_1(%arg0: i32) -> (i32, i32) {
    %c0_i32 = arith.constant 0 : i32
    %c0_i32_0 = arith.constant 0 : i32
    return %arg0, %c0_i32 : i32, i32
  }
  func.func @transform_2(%arg0: i32) -> (i32, i32, i32) {
    %c0_i32 = arith.constant 0 : i32
    %c0_i32_0 = arith.constant 0 : i32
    %c0_i32_1 = arith.constant 0 : i32
    return %arg0, %c0_i32, %c0_i32_0 : i32, i32, i32
  }
}

</mosaic_0001>

<bundles_post_ra>
// kernel: tpu_custom_call.1
= control target key start
LH: loop header
LB: loop body
LE: loop exit
PB: predicated region body
PF: predicated region fallthrough
CT: control target
= control target key end

     0   :  { %vm20_vm0 = vcmask 261120   ;;  %s151_s0 = inlined_call_operand.vmem [shape: f32[8,32], index: 0, kind: input, shape index: {}]   ;;  %s152_s1 = inlined_call_operand.vmem [shape: s32[8,1], index: 1, kind: input, shape index: {}]   ;;  %s153_s2 = inlined_call_operand.hbm [shape: f32[1,8,128], index: 2, kind: output, shape index: {}]  }
   0x1   :  { %v12_v0 = vld [vmem:[%s151_s0] sm:$0xff] }
   0x2   :  { %7 = vsyncpa [#allocation3], 0  ;;  %v21_v1 = vsel %vm20_vm0, %v12_v0, -inf  ;;  %v113_v2 = vmov 0   ;;  %v13_v3 = vld [vmem:[%s152_s1] sm:$0xff]  ;;  %v25_v7 = vlaneseq  ;;  %vm51_vm2 = vcmask 7168  }
   0x3   :  { %82 = vset.pattern.permute.xlu0 %v113_v2  ;;  %s114_s0 = smov [#allocation2]  }
   0x4   :  { %22 = vmax.xlane.f32.xlu0 %v21_v1  ;;  %v26_v8 = vand.u32 127, %v25_v7  ;;  %s70_s1 = sshll.u32 %s114_s0, 4  ;;  %s71_s1 = int_to_ptr.vmem [resolvable:$true] %s70_s1 }
   0x5   :  { %s89_s14 = scalar_lea.vmem %s71_s1, 128  ;;  %p94_p1 = scmp.lt.s32.totalorder %s71_s1, %s71_s1 }
   0x6   :  { %p90_p0 = scmp.ne.s32.totalorder %s71_s1, %s89_s14  ;;  %p95_p2 = scmp.lt.s32.totalorder %s89_s14, %s89_s14 }
   0x8   :  { %p96_p3 = por %p95_p2, %p94_p1 }
   0xa   :  { %p97_p4 = pnand %p96_p3, %p90_p0 }
  0x1a   :  { %28 = vperm.xlu0 %82, %v13_v3  }
  0x91   :  { %v23_v4 = vpop.xlane.xlu0 %22 }
  0x92   :  { %v24_v5 = vsub.f32 %v12_v0, %v23_v4 }
  0x94   :  { %v35_v6 = vmul.f32 1.442695, %v24_v5 }
  0x96   :  { %83 = vpow2.f32 %v35_v6 }
  0x99   :  { %v29_v9 = vpop.permute.xlu0 %28 }
  0x9a   :  { %vm30_vm1 = vcmp.eq.s32.totalorder %v26_v8, %v29_v9 }
  0x9b   :  { %v31_v12 = vsel %vm30_vm1, %v24_v5, 0.0 }
  0x9c   :  { %v32_v13 = vsel %vm20_vm0, %v31_v12, 0.0 }
  0xa0   :  { %v84_v10 = vpop.eup %83 }
  0xa1   :  { %v37_v11 = vsel %vm20_vm0, %v84_v10, 0.0 }
  0xa2   :  { %38 = vadd.xlane.f32.xlu1 %v37_v11 }
  0xa6   :  { %33 = vadd.xlane.f32.xlu1 %v32_v13 }
 0x12f   :  { %v39_v14 = vpop.xlane.xlu1 %38 }
 0x130   :  { %85 = vlog2.f32 %v39_v14 }
 0x133   :  { %v34_v17 = vpop.xlane.xlu1 %33 }
 0x13a   :  { %v86_v15 = vpop.eup %85 }
 0x13b   :  { %v41_v16 = vmul.f32 0.6931472, %v86_v15 }
 0x13d   :  { %v42_v18 = vsub.f32 %v41_v16, %v34_v17 }
 0x13f   :  { %v43_v19 = vsub.f32 0.0, %v42_v18 }
 0x141   :  { %v44_v20 = vmul.f32 1.442695, %v43_v19 }
 0x143   :  { %87 = vpow2.f32 %v44_v20 }
 0x14d   :  { %v88_v21 = vpop.eup %87 }
 0x14e   :  { %v46_v22 = vsub.f32 1.0, %v88_v21 }
 0x150   :  { %v47_v23 = vmul.f32 %v46_v22, %v46_v22 }
 0x152   :  { %v48_v24 = vmul.f32 0.25, %v47_v23 }
 0x154   :  { %v49_v25 = vmul.f32 %v48_v24, %v42_v18 }
 0x156   :  { %v52_v26 = vsel %vm51_vm2, %v49_v25, 0.0 }
 0x157   :  { %53 = vadd.xlane.f32.xlu1 %v52_v26 }
 0x1e4   :  { %v54_v27 = vpop.xlane.xlu1 %53 }
 0x1e5   :  { %v55_v28 = vrot.slane %v54_v27, 4 }
 0x1e7   :  { %v56_v29 = vadd.f32 %v55_v28, %v54_v27 }
 0x1e9   :  { %v57_v30 = vrot.slane %v56_v29, 2 }
 0x1eb   :  { %v58_v31 = vadd.f32 %v57_v30, %v56_v29 }
 0x1ed   :  { %v59_v32 = vrot.slane %v58_v31, 1 }
 0x1ef   :  { %v60_v33 = vadd.f32 %v59_v32, %v58_v31 }
 0x1f1   :  { %78 = vpush %v60_v33 }
 0x222   :  { %s79_s13 = spop %78 }
 0x223   :  { %v62_v34 = vstv %s79_s13 }
 0x224   :  { %63 = vst [vmem:[#allocation2] sm:$0xff] %v62_v34 }
 0x225   :  { %100 = shalt.err (!%p97_p4)
}
 0x226   :  { %s101_s17 = scalar_lea.hbm %s153_s2, 128 }
 0x227   :  { %p102_p5 = scmp.ne.s32.totalorder %s153_s2, %s101_s17  ;;  %p105_p6 = scmp.lt.u32.totalorder %s101_s17, %s153_s2 }
 0x229   :  { %p107_p7 = pnand %p105_p6, %p102_p5 }
 0x22b   :  { %110 = shalt.err (!%p107_p7)
}
 0x22c   :  { %73 = dma.vmem_to_hbm [thread:$0]  %s71_s1, 128, %s153_s2, [#allocation3]  }
 0x22d   :  { %111 = dma.done.wait [#allocation3], 128  }
 0x22e   :  { %112 = vsyncadd [#allocation3], 4294967168 }
 0x22f   :  { %77 = vsyncpa [#allocation3], 1 }

</bundles_post_ra>
